<compile_context>
chip_gen: v7x
topology: tpu7x:2x2x1
jax: 0.10.0
libtpu: 0.0.40
codegen_flags: <defaults>
</compile_context>

<pallas_src>
import functools

import jax
import jax.numpy as jnp
from jax.experimental import pallas as pl
from jax.experimental.pallas import tpu as pltpu


def rnn_kernel(xw_ref, h0_ref, w_hh_ref, w_out_ref, b_out_ref,
               out_ref, state_ref, h_scratch, hs_scratch):
    """One grid step == one chunk of K time steps (sequential / 'arbitrary')."""
    c = pl.program_id(0)
    B, H = h_scratch.shape
    K = hs_scratch.shape[0] // B

    # Initialize the carried hidden state from the provided initial state.
    @pl.when(c == 0)
    def _():
        h_scratch[...] = h0_ref[...].astype(jnp.float32)

    # Hoisted invariant load — once per chunk, not per time step.
    w_hh = w_hh_ref[...]            # (H, H) == W_hh^T

    h = h_scratch[...]              # (B, H) carried hidden state

    # Statically unrolled recurrence over the K steps of this chunk.
    # Serial chain per step: add + MXU matmul + tanh only; the input
    # projection xw (with biases folded in) arrives via the pipelined input.
    for k in range(K):
        xw = xw_ref[pl.ds(k * B, B), :]                    # (B, H)
        h = jnp.tanh(xw + jnp.dot(h, w_hh, preferred_element_type=jnp.float32))
        hs_scratch[pl.ds(k * B, B), :] = h

    h_scratch[...] = h
    state_ref[...] = h.astype(state_ref.dtype)

    # Decoder hoisted off the recurrent path: one batched (K*B, V) matmul,
    # written as a single lane-dense output slab.
    logits = jnp.dot(hs_scratch[...], w_out_ref[...],
                     preferred_element_type=jnp.float32) + b_out_ref[...]
    out_ref[...] = logits.astype(out_ref.dtype)


@functools.partial(jax.jit, static_argnames=("chunk",))
def rnn_model_forward(inputs_bt, h0, w_ih, w_hh, b_ih, b_hh, w_dense, b_dense,
                      *, chunk=None):
    """
    inputs_bt : (B, T) int32 token ids
    h0        : (1, B, H) float32 initial hidden state
    w_ih      : (H, V)   nn.RNN weight_ih_l0
    w_hh      : (H, H)   nn.RNN weight_hh_l0
    b_ih,b_hh : (H,)     nn.RNN biases
    w_dense   : (V, H)   nn.Linear weight
    b_dense   : (V,)     nn.Linear bias
    returns (output (T*B, V), state (1, B, H))
    """
    B, T = inputs_bt.shape
    H, V = w_ih.shape
    f32 = jnp.float32

    K = T if chunk is None else chunk
    assert T % K == 0, "chunk must divide num_steps"
    grid = (T // K,)

    # Wrapper-side glue (all off the serial critical path):
    #   * time-major flat ids (row index t*B + b, matching hiddens.view(-1, H))
    #   * input projection = row gather of W_ih^T, with the fused recurrent
    #     bias folded in, as one (T*B, H) pipelined input
    #   * pre-transposed weights so every kernel matmul is plain row-major.
    ids_flat = jnp.transpose(inputs_bt, (1, 0)).reshape(T * B)
    w_ih_t = jnp.transpose(w_ih).astype(f32)                         # (V, H)
    xw_all = (jnp.take(w_ih_t, ids_flat, axis=0)
              + (b_ih + b_hh).reshape(1, H)).astype(f32)             # (T*B, H)
    h0_bh = h0[0].astype(f32)                                        # (B, H)
    w_hh_t = jnp.transpose(w_hh).astype(f32)                         # (H, H)
    w_out_t = jnp.transpose(w_dense).astype(f32)                     # (H, V)
    b_out = b_dense.reshape(1, V).astype(f32)                        # (1, V)

    grid_spec = pltpu.PrefetchScalarGridSpec(
        num_scalar_prefetch=0,
        grid=grid,
        in_specs=[
            pl.BlockSpec((K * B, H), lambda c: (c, 0)),  # xw_all chunk (pipelined)
            pl.BlockSpec((B, H), lambda c: (0, 0)),      # h0
            pl.BlockSpec((H, H), lambda c: (0, 0)),      # W_hh^T
            pl.BlockSpec((H, V), lambda c: (0, 0)),      # W_dense^T
            pl.BlockSpec((1, V), lambda c: (0, 0)),      # b_dense
        ],
        out_specs=[
            pl.BlockSpec((K * B, V), lambda c: (c, 0)),  # per-chunk logits
            pl.BlockSpec((B, H), lambda c: (0, 0)),      # final state
        ],
        scratch_shapes=[
            pltpu.VMEM((B, H), jnp.float32),       # carried hidden state
            pltpu.VMEM((K * B, H), jnp.float32),   # chunk hidden accumulator
        ],
    )

    output, state_bh = pl.pallas_call(
        rnn_kernel,
        grid_spec=grid_spec,
        out_shape=(
            jax.ShapeDtypeStruct((T * B, V), f32),
            jax.ShapeDtypeStruct((B, H), f32),
        ),
        compiler_params=pltpu.CompilerParams(
            dimension_semantics=("arbitrary",),    # recurrence: must be sequential
        ),
    )(xw_all, h0_bh, w_hh_t, w_out_t, b_out)

    # output rows are already ordered t*B + b == hiddens.view(-1, H) @ dense
    state = state_bh.reshape(1, B, H)
    return output, state


def reference_forward(inputs_bt, h0, w_ih, w_hh, b_ih, b_hh, w_dense, b_dense):
    """Pure-JAX reference mirroring PyTorch nn.RNN(tanh) + Linear."""
    B, T = inputs_bt.shape
    H, V = w_ih.shape
    x = jax.nn.one_hot(jnp.transpose(inputs_bt, (1, 0)), V, dtype=jnp.float32)  # (T,B,V)

    def step(h, x_t):
        h_new = jnp.tanh(x_t @ w_ih.T + b_ih + h @ w_hh.T + b_hh)
        return h_new, h_new

    h_last, hs = jax.lax.scan(step, h0[0], x)
    hiddens = hs.reshape(-1, H)
    out = hiddens @ w_dense.T + b_dense
    return out, h_last.reshape(1, B, H)


if __name__ == "__main__":
    # Small deterministic config consistent with the module:
    # vocab_size = 128 (input & output dim), num_hiddens = 128, batch = 8, steps = 8.
    vocab_size = 128
    num_hiddens = 128
    batch_size = 8
    num_steps = 8

    key = jax.random.PRNGKey(0)
    k_ids, k_wih, k_whh, k_bih, k_bhh, k_wd, k_bd = jax.random.split(key, 7)

    bound_rnn = 1.0 / jnp.sqrt(num_hiddens)
    bound_dense = 1.0 / jnp.sqrt(num_hiddens)

    inputs = jax.random.randint(k_ids, (batch_size, num_steps), 0, vocab_size,
                                dtype=jnp.int32)
    h0 = jnp.zeros((1, batch_size, num_hiddens), jnp.float32)  # state=None -> zeros

    w_ih = jax.random.uniform(k_wih, (num_hiddens, vocab_size), jnp.float32,
                              -bound_rnn, bound_rnn)
    w_hh = jax.random.uniform(k_whh, (num_hiddens, num_hiddens), jnp.float32,
                              -bound_rnn, bound_rnn)
    b_ih = jax.random.uniform(k_bih, (num_hiddens,), jnp.float32, -bound_rnn, bound_rnn)
    b_hh = jax.random.uniform(k_bhh, (num_hiddens,), jnp.float32, -bound_rnn, bound_rnn)
    w_dense = jax.random.uniform(k_wd, (vocab_size, num_hiddens), jnp.float32,
                                 -bound_dense, bound_dense)
    b_dense = jax.random.uniform(k_bd, (vocab_size,), jnp.float32,
                                 -bound_dense, bound_dense)

    out, state = rnn_model_forward(inputs, h0, w_ih, w_hh, b_ih, b_hh,
                                   w_dense, b_dense)
    jax.block_until_ready((out, state))

    ref_out, ref_state = reference_forward(inputs, h0, w_ih, w_hh, b_ih, b_hh,
                                           w_dense, b_dense)
    assert out.shape == (num_steps * batch_size, vocab_size)
    assert state.shape == (1, batch_size, num_hiddens)
    assert jnp.allclose(out, ref_out, atol=1e-4, rtol=1e-4)
    assert jnp.allclose(state, ref_state, atol=1e-4, rtol=1e-4)

    print("KERNEL_OK")
</pallas_src>

<mosaic_0001>
module attributes {stable_mosaic.version = 11 : i64} {
  func.func @rnn_kernel(%arg0: i32, %arg1: memref<64x128xf32, #tpu.memory_space<vmem>>, %arg2: memref<8x128xf32, #tpu.memory_space<vmem>>, %arg3: memref<128x128xf32, #tpu.memory_space<vmem>>, %arg4: memref<128x128xf32, #tpu.memory_space<vmem>>, %arg5: memref<1x128xf32, #tpu.memory_space<vmem>>, %arg6: memref<64x128xf32, #tpu.memory_space<vmem>>, %arg7: memref<8x128xf32, #tpu.memory_space<vmem>>, %arg8: memref<8x128xf32, #tpu.memory_space<vmem>>, %arg9: memref<64x128xf32, #tpu.memory_space<vmem>>) attributes {dimension_semantics = [#tpu.dimension_semantics<arbitrary>], iteration_bounds = array<i64: 1>, scalar_prefetch = 0 : i64, scratch_operands = 2 : i64, tpu.core_type = #tpu.core_type<tc>, window_params = [{transform_indices = @transform_0, window_bounds = array<i64: 64, 128>}, {pipeline_mode = #tpu.pipeline_mode<synchronous>, transform_indices = @transform_1, window_bounds = array<i64: 8, 128>}, {pipeline_mode = #tpu.pipeline_mode<synchronous>, transform_indices = @transform_2, window_bounds = array<i64: 128, 128>}, {pipeline_mode = #tpu.pipeline_mode<synchronous>, transform_indices = @transform_3, window_bounds = array<i64: 128, 128>}, {pipeline_mode = #tpu.pipeline_mode<synchronous>, transform_indices = @transform_4, window_bounds = array<i64: 1, 128>}, {transform_indices = @transform_5, window_bounds = array<i64: 64, 128>}, {pipeline_mode = #tpu.pipeline_mode<synchronous>, transform_indices = @transform_6, window_bounds = array<i64: 8, 128>}]} {
    %c0_i32 = arith.constant 0 : i32
    %0 = arith.cmpi eq, %arg0, %c0_i32 : i32
    %1 = arith.extui %0 : i1 to i32
    %c0_i32_0 = arith.constant 0 : i32
    %2 = arith.cmpi ne, %1, %c0_i32_0 : i32
    scf.if %2 {
      %c0_49 = arith.constant 0 : index
      %c0_50 = arith.constant 0 : index
      %54 = vector.load %arg2[%c0_49, %c0_50] : memref<8x128xf32, #tpu.memory_space<vmem>>, vector<8x128xf32>
      %c0_51 = arith.constant 0 : index
      %c0_52 = arith.constant 0 : index
      %55 = vector.load %arg8[%c0_51, %c0_52] : memref<8x128xf32, #tpu.memory_space<vmem>>, vector<8x128xf32>
      tpu.vector_store %arg8[%c0_51, %c0_52], %54 {strides = array<i32>} : memref<8x128xf32, #tpu.memory_space<vmem>>, vector<8x128xf32>,
    } else {
    }
    %c0 = arith.constant 0 : index
    %c0_1 = arith.constant 0 : index
    %3 = vector.load %arg3[%c0, %c0_1] : memref<128x128xf32, #tpu.memory_space<vmem>>, vector<128x128xf32>
    %c0_2 = arith.constant 0 : index
    %c0_3 = arith.constant 0 : index
    %4 = vector.load %arg8[%c0_2, %c0_3] : memref<8x128xf32, #tpu.memory_space<vmem>>, vector<8x128xf32>
    %c0_4 = arith.constant 0 : index
    %c0_5 = arith.constant 0 : index
    %5 = vector.load %arg1[%c0_4, %c0_5] : memref<64x128xf32, #tpu.memory_space<vmem>>, vector<8x128xf32>
    %cst = arith.constant dense<0.000000e+00> : vector<8x128xf32>
    %6 = tpu.matmul %4, %3, %cst {dimension_numbers = #tpu.dot_dimension_numbers<[1], [0], [0], [1], [0, 0, 1, 1], [], []>} : vector<8x128xf32>, vector<128x128xf32>, vector<8x128xf32> -> vector<8x128xf32>
    %7 = arith.addf %5, %6 : vector<8x128xf32>
    %8 = math.tanh %7 : vector<8x128xf32>
    %c0_6 = arith.constant 0 : index
    %c0_7 = arith.constant 0 : index
    %9 = vector.load %arg9[%c0_6, %c0_7] : memref<64x128xf32, #tpu.memory_space<vmem>>, vector<8x128xf32>
    tpu.vector_store %arg9[%c0_6, %c0_7], %8 {strides = array<i32>} : memref<64x128xf32, #tpu.memory_space<vmem>>, vector<8x128xf32>,
    %c8 = arith.constant 8 : index
    %c0_8 = arith.constant 0 : index
    %10 = vector.load %arg1[%c8, %c0_8] : memref<64x128xf32, #tpu.memory_space<vmem>>, vector<8x128xf32>
    %cst_9 = arith.constant dense<0.000000e+00> : vector<8x128xf32>
    %11 = tpu.matmul %8, %3, %cst_9 {dimension_numbers = #tpu.dot_dimension_numbers<[1], [0], [0], [1], [0, 0, 1, 1], [], []>} : vector<8x128xf32>, vector<128x128xf32>, vector<8x128xf32> -> vector<8x128xf32>
    %12 = arith.addf %10, %11 : vector<8x128xf32>
    %13 = math.tanh %12 : vector<8x128xf32>
    %c8_10 = arith.constant 8 : index
    %c0_11 = arith.constant 0 : index
    %14 = vector.load %arg9[%c8_10, %c0_11] : memref<64x128xf32, #tpu.memory_space<vmem>>, vector<8x128xf32>
    tpu.vector_store %arg9[%c8_10, %c0_11], %13 {strides = array<i32>} : memref<64x128xf32, #tpu.memory_space<vmem>>, vector<8x128xf32>,
    %c16 = arith.constant 16 : index
    %c0_12 = arith.constant 0 : index
    %15 = vector.load %arg1[%c16, %c0_12] : memref<64x128xf32, #tpu.memory_space<vmem>>, vector<8x128xf32>
    %cst_13 = arith.constant dense<0.000000e+00> : vector<8x128xf32>
    %16 = tpu.matmul %13, %3, %cst_13 {dimension_numbers = #tpu.dot_dimension_numbers<[1], [0], [0], [1], [0, 0, 1, 1], [], []>} : vector<8x128xf32>, vector<128x128xf32>, vector<8x128xf32> -> vector<8x128xf32>
    %17 = arith.addf %15, %16 : vector<8x128xf32>
    %18 = math.tanh %17 : vector<8x128xf32>
    %c16_14 = arith.constant 16 : index
    %c0_15 = arith.constant 0 : index
    %19 = vector.load %arg9[%c16_14, %c0_15] : memref<64x128xf32, #tpu.memory_space<vmem>>, vector<8x128xf32>
    tpu.vector_store %arg9[%c16_14, %c0_15], %18 {strides = array<i32>} : memref<64x128xf32, #tpu.memory_space<vmem>>, vector<8x128xf32>,
    %c24 = arith.constant 24 : index
    %c0_16 = arith.constant 0 : index
    %20 = vector.load %arg1[%c24, %c0_16] : memref<64x128xf32, #tpu.memory_space<vmem>>, vector<8x128xf32>
    %cst_17 = arith.constant dense<0.000000e+00> : vector<8x128xf32>
    %21 = tpu.matmul %18, %3, %cst_17 {dimension_numbers = #tpu.dot_dimension_numbers<[1], [0], [0], [1], [0, 0, 1, 1], [], []>} : vector<8x128xf32>, vector<128x128xf32>, vector<8x128xf32> -> vector<8x128xf32>
    %22 = arith.addf %20, %21 : vector<8x128xf32>
    %23 = math.tanh %22 : vector<8x128xf32>
    %c24_18 = arith.constant 24 : index
    %c0_19 = arith.constant 0 : index
    %24 = vector.load %arg9[%c24_18, %c0_19] : memref<64x128xf32, #tpu.memory_space<vmem>>, vector<8x128xf32>
    tpu.vector_store %arg9[%c24_18, %c0_19], %23 {strides = array<i32>} : memref<64x128xf32, #tpu.memory_space<vmem>>, vector<8x128xf32>,
    %c32 = arith.constant 32 : index
    %c0_20 = arith.constant 0 : index
    %25 = vector.load %arg1[%c32, %c0_20] : memref<64x128xf32, #tpu.memory_space<vmem>>, vector<8x128xf32>
    %cst_21 = arith.constant dense<0.000000e+00> : vector<8x128xf32>
    %26 = tpu.matmul %23, %3, %cst_21 {dimension_numbers = #tpu.dot_dimension_numbers<[1], [0], [0], [1], [0, 0, 1, 1], [], []>} : vector<8x128xf32>, vector<128x128xf32>, vector<8x128xf32> -> vector<8x128xf32>
    %27 = arith.addf %25, %26 : vector<8x128xf32>
    %28 = math.tanh %27 : vector<8x128xf32>
    %c32_22 = arith.constant 32 : index
    %c0_23 = arith.constant 0 : index
    %29 = vector.load %arg9[%c32_22, %c0_23] : memref<64x128xf32, #tpu.memory_space<vmem>>, vector<8x128xf32>
    tpu.vector_store %arg9[%c32_22, %c0_23], %28 {strides = array<i32>} : memref<64x128xf32, #tpu.memory_space<vmem>>, vector<8x128xf32>,
    %c40 = arith.constant 40 : index
    %c0_24 = arith.constant 0 : index
    %30 = vector.load %arg1[%c40, %c0_24] : memref<64x128xf32, #tpu.memory_space<vmem>>, vector<8x128xf32>
    %cst_25 = arith.constant dense<0.000000e+00> : vector<8x128xf32>
    %31 = tpu.matmul %28, %3, %cst_25 {dimension_numbers = #tpu.dot_dimension_numbers<[1], [0], [0], [1], [0, 0, 1, 1], [], []>} : vector<8x128xf32>, vector<128x128xf32>, vector<8x128xf32> -> vector<8x128xf32>
    %32 = arith.addf %30, %31 : vector<8x128xf32>
    %33 = math.tanh %32 : vector<8x128xf32>
    %c40_26 = arith.constant 40 : index
    %c0_27 = arith.constant 0 : index
    %34 = vector.load %arg9[%c40_26, %c0_27] : memref<64x128xf32, #tpu.memory_space<vmem>>, vector<8x128xf32>
    tpu.vector_store %arg9[%c40_26, %c0_27], %33 {strides = array<i32>} : memref<64x128xf32, #tpu.memory_space<vmem>>, vector<8x128xf32>,
    %c48 = arith.constant 48 : index
    %c0_28 = arith.constant 0 : index
    %35 = vector.load %arg1[%c48, %c0_28] : memref<64x128xf32, #tpu.memory_space<vmem>>, vector<8x128xf32>
    %cst_29 = arith.constant dense<0.000000e+00> : vector<8x128xf32>
    %36 = tpu.matmul %33, %3, %cst_29 {dimension_numbers = #tpu.dot_dimension_numbers<[1], [0], [0], [1], [0, 0, 1, 1], [], []>} : vector<8x128xf32>, vector<128x128xf32>, vector<8x128xf32> -> vector<8x128xf32>
    %37 = arith.addf %35, %36 : vector<8x128xf32>
    %38 = math.tanh %37 : vector<8x128xf32>
    %c48_30 = arith.constant 48 : index
    %c0_31 = arith.constant 0 : index
    %39 = vector.load %arg9[%c48_30, %c0_31] : memref<64x128xf32, #tpu.memory_space<vmem>>, vector<8x128xf32>
    tpu.vector_store %arg9[%c48_30, %c0_31], %38 {strides = array<i32>} : memref<64x128xf32, #tpu.memory_space<vmem>>, vector<8x128xf32>,
    %c56 = arith.constant 56 : index
    %c0_32 = arith.constant 0 : index
    %40 = vector.load %arg1[%c56, %c0_32] : memref<64x128xf32, #tpu.memory_space<vmem>>, vector<8x128xf32>
    %cst_33 = arith.constant dense<0.000000e+00> : vector<8x128xf32>
    %41 = tpu.matmul %38, %3, %cst_33 {dimension_numbers = #tpu.dot_dimension_numbers<[1], [0], [0], [1], [0, 0, 1, 1], [], []>} : vector<8x128xf32>, vector<128x128xf32>, vector<8x128xf32> -> vector<8x128xf32>
    %42 = arith.addf %40, %41 : vector<8x128xf32>
    %43 = math.tanh %42 : vector<8x128xf32>
    %c56_34 = arith.constant 56 : index
    %c0_35 = arith.constant 0 : index
    %44 = vector.load %arg9[%c56_34, %c0_35] : memref<64x128xf32, #tpu.memory_space<vmem>>, vector<8x128xf32>
    tpu.vector_store %arg9[%c56_34, %c0_35], %43 {strides = array<i32>} : memref<64x128xf32, #tpu.memory_space<vmem>>, vector<8x128xf32>,
    %c0_36 = arith.constant 0 : index
    %c0_37 = arith.constant 0 : index
    %45 = vector.load %arg8[%c0_36, %c0_37] : memref<8x128xf32, #tpu.memory_space<vmem>>, vector<8x128xf32>
    tpu.vector_store %arg8[%c0_36, %c0_37], %43 {strides = array<i32>} : memref<8x128xf32, #tpu.memory_space<vmem>>, vector<8x128xf32>,
    %c0_38 = arith.constant 0 : index
    %c0_39 = arith.constant 0 : index
    %46 = vector.load %arg7[%c0_38, %c0_39] : memref<8x128xf32, #tpu.memory_space<vmem>>, vector<8x128xf32>
    tpu.vector_store %arg7[%c0_38, %c0_39], %43 {strides = array<i32>} : memref<8x128xf32, #tpu.memory_space<vmem>>, vector<8x128xf32>,
    %c0_40 = arith.constant 0 : index
    %c0_41 = arith.constant 0 : index
    %47 = vector.load %arg9[%c0_40, %c0_41] : memref<64x128xf32, #tpu.memory_space<vmem>>, vector<64x128xf32>
    %c0_42 = arith.constant 0 : index
    %c0_43 = arith.constant 0 : index
    %48 = vector.load %arg4[%c0_42, %c0_43] : memref<128x128xf32, #tpu.memory_space<vmem>>, vector<128x128xf32>
    %cst_44 = arith.constant dense<0.000000e+00> : vector<64x128xf32>
    %49 = tpu.matmul %47, %48, %cst_44 {dimension_numbers = #tpu.dot_dimension_numbers<[1], [0], [0], [1], [0, 0, 1, 1], [], []>} : vector<64x128xf32>, vector<128x128xf32>, vector<64x128xf32> -> vector<64x128xf32>
    %c0_45 = arith.constant 0 : index
    %c0_46 = arith.constant 0 : index
    %50 = vector.load %arg5[%c0_45, %c0_46] : memref<1x128xf32, #tpu.memory_space<vmem>>, vector<1x128xf32>
    %51 = vector.broadcast %50 : vector<1x128xf32> to vector<64x128xf32>
    %52 = arith.addf %49, %51 : vector<64x128xf32>
    %c0_47 = arith.constant 0 : index
    %c0_48 = arith.constant 0 : index
    %53 = vector.load %arg6[%c0_47, %c0_48] : memref<64x128xf32, #tpu.memory_space<vmem>>, vector<64x128xf32>
    tpu.vector_store %arg6[%c0_47, %c0_48], %52 {strides = array<i32>} : memref<64x128xf32, #tpu.memory_space<vmem>>, vector<64x128xf32>,
    return
  }
  func.func @transform_0(%arg0: i32) -> (i32, i32) {
    %c0_i32 = arith.constant 0 : i32
    %c0_i32_0 = arith.constant 0 : i32
    return %arg0, %c0_i32 : i32, i32
  }
  func.func @transform_1(%arg0: i32) -> (i32, i32) {
    %c0_i32 = arith.constant 0 : i32
    %c0_i32_0 = arith.constant 0 : i32
    %c0_i32_1 = arith.constant 0 : i32
    return %c0_i32, %c0_i32_0 : i32, i32
  }
  func.func @transform_2(%arg0: i32) -> (i32, i32) {
    %c0_i32 = arith.constant 0 : i32
    %c0_i32_0 = arith.constant 0 : i32
    %c0_i32_1 = arith.constant 0 : i32
    return %c0_i32, %c0_i32_0 : i32, i32
  }
  func.func @transform_3(%arg0: i32) -> (i32, i32) {
    %c0_i32 = arith.constant 0 : i32
    %c0_i32_0 = arith.constant 0 : i32
    %c0_i32_1 = arith.constant 0 : i32
    return %c0_i32, %c0_i32_0 : i32, i32
  }
  func.func @transform_4(%arg0: i32) -> (i32, i32) {
    %c0_i32 = arith.constant 0 : i32
    %c0_i32_0 = arith.constant 0 : i32
    %c0_i32_1 = arith.constant 0 : i32
    return %c0_i32, %c0_i32_0 : i32, i32
  }
  func.func @transform_5(%arg0: i32) -> (i32, i32) {
    %c0_i32 = arith.constant 0 : i32
    %c0_i32_0 = arith.constant 0 : i32
    return %arg0, %c0_i32 : i32, i32
  }
  func.func @transform_6(%arg0: i32) -> (i32, i32) {
    %c0_i32 = arith.constant 0 : i32
    %c0_i32_0 = arith.constant 0 : i32
    %c0_i32_1 = arith.constant 0 : i32
    return %c0_i32, %c0_i32_0 : i32, i32
  }
}

</mosaic_0001>

<bundles_post_ra>
// kernel: rnn_model_forward.1
= control target key start
LH: loop header
LB: loop body
LE: loop exit
PB: predicated region body
PF: predicated region fallthrough
CT: control target
= control target key end

     0   :  { %12 = vsyncpa [#allocation5], 0  ;;  %v1595_v3 = vmov 0.0|0.0   ;;  %vm1596_vm0 = vmmov 0   ;;  %v1597_v6 = vmov 0.0   ;;  %s1967_s0 = inlined_call_operand.vmem [shape: f32[64,128], index: 0, kind: input, shape index: {}]   ;;  %s1968_s1 = inlined_call_operand.vmem [shape: f32[8,128], index: 1, kind: input, shape index: {}]   ;;  %s1969_s2 = inlined_call_operand.vmem [shape: f32[128,128], index: 2, kind: input, shape index: {}]   ;;  %s1970_s3 = inlined_call_operand.vmem [shape: f32[128,128], index: 3, kind: input, shape index: {}]   ;;  %s1971_s4 = inlined_call_operand.vmem [shape: f32[1,128], index: 4, kind: input, shape index: {}]   ;;  %s1972_s5 = inlined_call_operand.hbm [shape: f32[64,128], index: 5, kind: output, shape index: {0}]   ;;  %s1973_s6 = inlined_call_operand.hbm [shape: f32[8,128], index: 6, kind: output, shape index: {1}]  }
   0x1   :  { %v30_v0 = vld [vmem:[%s1969_s2] sm:$0xff]  ;;  %v31_v1 = vld [vmem:[%s1969_s2 + $0x8] sm:$0xff]  ;;  %v32_v2 = vld [vmem:[%s1969_s2 + $0x10] sm:$0xff]  ;;  %1300 = vmatprep.subr.bf16.mxu1 %v1595_v3  ;;  %1008 = vmatprep.mubr.msk.f32.mxu1 %vm1596_vm0, %v1597_v6 }
   0x2   :  { %v1647_v4 = vpack.c.bf16 %v31_v1, %v30_v0  ;;  %v33_v5 = vld [vmem:[%s1969_s2 + $0x18] sm:$0xff]  ;;  %1348 = vmatprep.subr.bf16.mxu0 %v1595_v3  ;;  %1078 = vmatprep.mubr.msk.f32.mxu0 %vm1596_vm0, %v1597_v6  ;;  %v34_v8 = vld [vmem:[%s1969_s2 + $0x20] sm:$0xff]  ;;  %v35_v9 = vld [vmem:[%s1969_s2 + $0x28] sm:$0xff] }
   0x3   :  { %v1658_v7 = vpack.c.bf16 %v33_v5, %v32_v2 }
   0x4   :  { %1302 = vmatpush3.bf16.msra.mxu1 %v1647_v4  ;;  %1350 = vmatpush3.bf16.msra.mxu0 %v1647_v4 }
   0x5   :  { %1303 = vmatprep.subr.bf16.mxu1 %v1595_v3  ;;  %1351 = vmatprep.subr.bf16.mxu0 %v1595_v3 }
   0x6   :  { %13 = vsyncpa [#allocation7], 0  ;;  %v1670_v10 = vpack.c.bf16 %v35_v9, %v34_v8  ;;  %v36_v11 = vld [vmem:[%s1969_s2 + $0x30] sm:$0xff]  ;;  %v37_v12 = vld [vmem:[%s1969_s2 + $0x38] sm:$0xff]  ;;  %s1598_s27 = smov [#allocation6]  }
   0x7   :  { %v1682_v13 = vpack.c.bf16 %v37_v12, %v36_v11  ;;  %v38_v14 = vld [vmem:[%s1969_s2 + $0x40] sm:$0xff]  ;;  %v39_v15 = vld [vmem:[%s1969_s2 + $0x48] sm:$0xff]  ;;  %v40_v17 = vld [vmem:[%s1969_s2 + $0x50] sm:$0xff]  ;;  %s803_s28 = sshll.u32 %s1598_s27, 4  ;;  %s804_s28 = int_to_ptr.vmem [resolvable:$true] %s803_s28 }
   0x8   :  { %1305 = vmatpush3.bf16.msra.mxu1 %v1658_v7  ;;  %1353 = vmatpush3.bf16.msra.mxu0 %v1658_v7  ;;  %v1694_v16 = vpack.c.bf16 %v39_v15, %v38_v14  ;;  %v41_v18 = vld [vmem:[%s1969_s2 + $0x58] sm:$0xff]  ;;  %v42_v20 = vld [vmem:[%s1969_s2 + $0x60] sm:$0xff]  ;;  %v43_v21 = vld [vmem:[%s1969_s2 + $0x68] sm:$0xff]  ;;  %s1547_s29 = scalar_lea.vmem %s804_s28, 128  ;;  %p1552_p1 = scmp.lt.s32.totalorder %s804_s28, %s804_s28 }
   0x9   :  { %1306 = vmatprep.subr.bf16.mxu1 %v1595_v3  ;;  %1354 = vmatprep.subr.bf16.mxu0 %v1595_v3  ;;  %v1706_v19 = vpack.c.bf16 %v41_v18, %v40_v17  ;;  %v1718_v22 = vpack.c.bf16 %v43_v21, %v42_v20  ;;  %v44_v23 = vld [vmem:[%s1969_s2 + $0x70] sm:$0xff]  ;;  %v45_v24 = vld [vmem:[%s1969_s2 + $0x78] sm:$0xff]  ;;  %v28_v26 = vld [vmem:[%s1968_s1] sm:$0xff]  ;;  %p1548_p0 = scmp.ne.s32.totalorder %s804_s28, %s1547_s29  ;;  %p1553_p2 = scmp.lt.s32.totalorder %s1547_s29, %s1547_s29 }
   0xa   :  { %v1730_v25 = vpack.c.bf16 %v45_v24, %v44_v23  ;;  %v47_v27 = vld [vmem:[%s1967_s0] sm:$0xff]  ;;  %v121_v32 = vld [vmem:[%s1967_s0 + $0x8] sm:$0xff]  ;;  %v195_v37 = vld [vmem:[%s1967_s0 + $0x10] sm:$0xff] }
   0xb   :  { %v269_v42 = vld [vmem:[%s1967_s0 + $0x18] sm:$0xff]  ;;  %v343_v47 = vld [vmem:[%s1967_s0 + $0x20] sm:$0xff]  ;;  %v650_v53 = vld [vmem:[%s1970_s3 + $0x8] sm:$0xff]  ;;  %p1554_p3 = por %p1553_p2, %p1552_p1 }
   0xc   :  { %1308 = vmatpush3.bf16.msra.mxu1 %v1670_v10  ;;  %1356 = vmatpush3.bf16.msra.mxu0 %v1670_v10  ;;  %v649_v52 = vld [vmem:[%s1970_s3] sm:$0xff]  ;;  %v417_v55 = vld [vmem:[%s1967_s0 + $0x28] sm:$0xff]  ;;  %v651_v59 = vld [vmem:[%s1970_s3 + $0x10] sm:$0xff] }
   0xd   :  { %1309 = vmatprep.subr.bf16.mxu1 %v1595_v3  ;;  %1357 = vmatprep.subr.bf16.mxu0 %v1595_v3  ;;  %v1492_v54 = vpack.c.bf16 %v650_v53, %v649_v52  ;;  %v652_v60 = vld [vmem:[%s1970_s3 + $0x18] sm:$0xff]  ;;  %v653_v63 = vld [vmem:[%s1970_s3 + $0x20] sm:$0xff]  ;;  %v654_v0 = vld [vmem:[%s1970_s3 + $0x28] sm:$0xff]  ;;  %p1555_p4 = pnand %p1554_p3, %p1548_p0 }
   0xe   :  { %v1496_v61 = vpack.c.bf16 %v652_v60, %v651_v59  ;;  %v1500_v1 = vpack.c.bf16 %v654_v0, %v653_v63  ;;  %v655_v2 = vld [vmem:[%s1970_s3 + $0x30] sm:$0xff]  ;;  %v657_v5 = vld [vmem:[%s1970_s3 + $0x40] sm:$0xff]  ;;  %v660_v9 = vld [vmem:[%s1970_s3 + $0x58] sm:$0xff] }
   0xf   :  { %v659_v8 = vld [vmem:[%s1970_s3 + $0x50] sm:$0xff]  ;;  %v661_v11 = vld [vmem:[%s1970_s3 + $0x60] sm:$0xff]  ;;  %v662_v12 = vld [vmem:[%s1970_s3 + $0x68] sm:$0xff] }
  0x10   :  { %1311 = vmatpush3.bf16.msra.mxu1 %v1682_v13  ;;  %1359 = vmatpush3.bf16.msra.mxu0 %v1682_v13  ;;  %v663_v14 = vld [vmem:[%s1970_s3 + $0x70] sm:$0xff]  ;;  %v664_v15 = vld [vmem:[%s1970_s3 + $0x78] sm:$0xff] }
  0x11   :  { %1312 = vmatprep.subr.bf16.mxu1 %v1595_v3  ;;  %1360 = vmatprep.subr.bf16.mxu0 %v1595_v3  ;;  %v491_v17 = vld [vmem:[%s1967_s0 + $0x30] sm:$0xff] }
  0x14   :  { %1314 = vmatpush3.bf16.msra.mxu1 %v1694_v16  ;;  %1362 = vmatpush3.bf16.msra.mxu0 %v1694_v16 }
  0x15   :  { %1315 = vmatprep.subr.bf16.mxu1 %v1595_v3  ;;  %1363 = vmatprep.subr.bf16.mxu0 %v1595_v3 }
  0x18   :  { %1317 = vmatpush3.bf16.msra.mxu1 %v1706_v19  ;;  %1365 = vmatpush3.bf16.msra.mxu0 %v1706_v19 }
  0x19   :  { %1318 = vmatprep.subr.bf16.mxu1 %v1595_v3  ;;  %1366 = vmatprep.subr.bf16.mxu0 %v1595_v3 }
  0x1c   :  { %1320 = vmatpush3.bf16.msra.mxu1 %v1718_v22  ;;  %1368 = vmatpush3.bf16.msra.mxu0 %v1718_v22 }
  0x1d   :  { %1321 = vmatprep.subr.bf16.mxu1 %v1595_v3  ;;  %1369 = vmatprep.subr.bf16.mxu0 %v1595_v3 }
  0x20   :  { %1323 = vmatpush3.bf16.msra.mxu1 %v1730_v25  ;;  %1371 = vmatpush3.bf16.msra.mxu0 %v1730_v25 }
  0x21   :  { %1324 = vmatprep.subr.bf16.mxu1 %v1595_v3  ;;  %1396 = vmatprep.subr.bf16.mxu0 %v1595_v3 }
  0x23   :  { %1009 = vmatmul.mubr.f32.vlgmr.msra.gmra.mrb[0].mxu1 %v28_v26 }
  0x24   :  { %1326 = vmatpush3.bf16.msra.mxu1 %v1647_v4  ;;  %1043 = vmatprep.mubr.msk.f32.mxu1 %vm1596_vm0, %v1597_v6 }
  0x25   :  { %1327 = vmatprep.subr.bf16.mxu1 %v1595_v3 }
  0x28   :  { %1329 = vmatpush3.bf16.msra.mxu1 %v1658_v7 }
  0x29   :  { %1330 = vmatprep.subr.bf16.mxu1 %v1595_v3 }
  0x2c   :  { %1332 = vmatpush3.bf16.msra.mxu1 %v1670_v10 }
  0x2d   :  { %1333 = vmatprep.subr.bf16.mxu1 %v1595_v3 }
  0x30   :  { %1335 = vmatpush3.bf16.msra.mxu1 %v1682_v13 }
  0x31   :  { %1336 = vmatprep.subr.bf16.mxu1 %v1595_v3 }
  0x34   :  { %1338 = vmatpush3.bf16.msra.mxu1 %v1694_v16 }
  0x35   :  { %1339 = vmatprep.subr.bf16.mxu1 %v1595_v3 }
  0x38   :  { %1341 = vmatpush3.bf16.msra.mxu1 %v1706_v19 }
  0x39   :  { %1342 = vmatprep.subr.bf16.mxu1 %v1595_v3 }
  0x3c   :  { %1344 = vmatpush3.bf16.msra.mxu1 %v1718_v22 }
  0x3d   :  { %1345 = vmatprep.subr.bf16.mxu1 %v1595_v3 }
  0x40   :  { %1347 = vmatpush3.bf16.msra.mxu1 %v1730_v25 }
  0x41   :  { %1372 = vmatprep.subr.bf16.mxu1 %v1595_v3 }
  0xf6   :  { %v114_v28 = vpop.f32.mrb[0].mxu1 }
  0xf7   :  { %v118_v29 = vadd.f32 %v114_v28, %v47_v27  ;;  %v1010_v30 = vpop.f32.mrb[1].mxu1 }
  0xf9   :  { %1531 = vtanh.f32 %v118_v29 }
 0x103   :  { %v1763_v31 = vpop.eup %1531 }
 0x104   :  { %1044 = vmatmul.mubr.f32.vlgmr.msra.gmra.mrb[2].mxu1 %v1763_v31 }
 0x105   :  { %1374 = vmatpush3.bf16.msra.mxu1 %v1647_v4  ;;  %1113 = vmatprep.mubr.msk.f32.mxu1 %vm1596_vm0, %v1597_v6 }
 0x106   :  { %1375 = vmatprep.subr.bf16.mxu1 %v1595_v3 }
 0x109   :  { %1377 = vmatpush3.bf16.msra.mxu1 %v1658_v7 }
 0x10a   :  { %1378 = vmatprep.subr.bf16.mxu1 %v1595_v3 }
 0x10d   :  { %1380 = vmatpush3.bf16.msra.mxu1 %v1670_v10 }
 0x10e   :  { %1381 = vmatprep.subr.bf16.mxu1 %v1595_v3 }
 0x111   :  { %1383 = vmatpush3.bf16.msra.mxu1 %v1682_v13 }
 0x112   :  { %1384 = vmatprep.subr.bf16.mxu1 %v1595_v3 }
 0x115   :  { %1386 = vmatpush3.bf16.msra.mxu1 %v1694_v16 }
 0x116   :  { %1387 = vmatprep.subr.bf16.mxu1 %v1595_v3 }
 0x119   :  { %1389 = vmatpush3.bf16.msra.mxu1 %v1706_v19 }
 0x11a   :  { %1390 = vmatprep.subr.bf16.mxu1 %v1595_v3 }
 0x11d   :  { %1392 = vmatpush3.bf16.msra.mxu1 %v1718_v22 }
 0x11e   :  { %1393 = vmatprep.subr.bf16.mxu1 %v1595_v3 }
 0x121   :  { %1395 = vmatpush3.bf16.msra.mxu1 %v1730_v25 }
 0x122   :  { %1420 = vmatprep.subr.bf16.mxu1 %v1595_v3 }
 0x1d7   :  { %v188_v33 = vpop.f32.mrb[2].mxu1 }
 0x1d8   :  { %v192_v34 = vadd.f32 %v188_v33, %v121_v32  ;;  %v1045_v35 = vpop.f32.mrb[3].mxu1 }
 0x1d9   :  { %v565_v35 = vld [vmem:[%s1967_s0 + $0x38] sm:$0xff] }
 0x1da   :  { %1533 = vtanh.f32 %v192_v34 }
 0x1e4   :  { %v1787_v36 = vpop.eup %1533 }
 0x1e5   :  { %1079 = vmatmul.mubr.f32.vlgmr.msra.gmra.mrb[0].mxu0 %v1787_v36 }
 0x1e6   :  { %1398 = vmatpush3.bf16.msra.mxu0 %v1647_v4  ;;  %1148 = vmatprep.mubr.msk.f32.mxu0 %vm1596_vm0, %v1597_v6 }
 0x1e7   :  { %1399 = vmatprep.subr.bf16.mxu0 %v1595_v3 }
 0x1ea   :  { %1401 = vmatpush3.bf16.msra.mxu0 %v1658_v7 }
 0x1eb   :  { %1402 = vmatprep.subr.bf16.mxu0 %v1595_v3 }
 0x1ee   :  { %1404 = vmatpush3.bf16.msra.mxu0 %v1670_v10 }
 0x1ef   :  { %1405 = vmatprep.subr.bf16.mxu0 %v1595_v3 }
 0x1f2   :  { %1407 = vmatpush3.bf16.msra.mxu0 %v1682_v13 }
 0x1f3   :  { %1408 = vmatprep.subr.bf16.mxu0 %v1595_v3 }
 0x1f6   :  { %1410 = vmatpush3.bf16.msra.mxu0 %v1694_v16 }
 0x1f7   :  { %1411 = vmatprep.subr.bf16.mxu0 %v1595_v3 }
 0x1fa   :  { %1413 = vmatpush3.bf16.msra.mxu0 %v1706_v19 }
 0x1fb   :  { %1414 = vmatprep.subr.bf16.mxu0 %v1595_v3 }
 0x1fe   :  { %1416 = vmatpush3.bf16.msra.mxu0 %v1718_v22 }
 0x1ff   :  { %1417 = vmatprep.subr.bf16.mxu0 %v1595_v3 }
 0x202   :  { %1419 = vmatpush3.bf16.msra.mxu0 %v1730_v25 }
 0x203   :  { %1444 = vmatprep.subr.bf16.mxu0 %v1595_v3 }
 0x2b8   :  { %v262_v38 = vpop.f32.mrb[0].mxu0 }
 0x2b9   :  { %v266_v39 = vadd.f32 %v262_v38, %v195_v37  ;;  %v1080_v40 = vpop.f32.mrb[1].mxu0 }
 0x2bb   :  { %1535 = vtanh.f32 %v266_v39 }
 0x2c5   :  { %v1811_v41 = vpop.eup %1535 }
 0x2c6   :  { %1114 = vmatmul.mubr.f32.vlgmr.msra.gmra.mrb[4].mxu1 %v1811_v41 }
 0x2c7   :  { %1422 = vmatpush3.bf16.msra.mxu1 %v1647_v4  ;;  %1183 = vmatprep.mubr.msk.f32.mxu1 %vm1596_vm0, %v1597_v6 }
 0x2c8   :  { %1423 = vmatprep.subr.bf16.mxu1 %v1595_v3 }
 0x2cb   :  { %1425 = vmatpush3.bf16.msra.mxu1 %v1658_v7 }
 0x2cc   :  { %1426 = vmatprep.subr.bf16.mxu1 %v1595_v3 }
 0x2cf   :  { %1428 = vmatpush3.bf16.msra.mxu1 %v1670_v10 }
 0x2d0   :  { %1429 = vmatprep.subr.bf16.mxu1 %v1595_v3 }
 0x2d3   :  { %1431 = vmatpush3.bf16.msra.mxu1 %v1682_v13 }
 0x2d4   :  { %1432 = vmatprep.subr.bf16.mxu1 %v1595_v3 }
 0x2d7   :  { %1434 = vmatpush3.bf16.msra.mxu1 %v1694_v16 }
 0x2d8   :  { %1435 = vmatprep.subr.bf16.mxu1 %v1595_v3 }
 0x2db   :  { %1437 = vmatpush3.bf16.msra.mxu1 %v1706_v19 }
 0x2dc   :  { %1438 = vmatprep.subr.bf16.mxu1 %v1595_v3 }
 0x2df   :  { %1440 = vmatpush3.bf16.msra.mxu1 %v1718_v22 }
 0x2e0   :  { %1441 = vmatprep.subr.bf16.mxu1 %v1595_v3 }
 0x2e3   :  { %1443 = vmatpush3.bf16.msra.mxu1 %v1730_v25 }
 0x2e4   :  { %1468 = vmatprep.subr.bf16.mxu1 %v1595_v3 }
 0x399   :  { %v336_v43 = vpop.f32.mrb[4].mxu1 }
 0x39a   :  { %v340_v44 = vadd.f32 %v336_v43, %v269_v42  ;;  %v1115_v45 = vpop.f32.mrb[5].mxu1 }
 0x39c   :  { %1537 = vtanh.f32 %v340_v44 }
 0x3a6   :  { %v1835_v46 = vpop.eup %1537 }
 0x3a7   :  { %1149 = vmatmul.mubr.f32.vlgmr.msra.gmra.mrb[2].mxu0 %v1835_v46 }
 0x3a8   :  { %1446 = vmatpush3.bf16.msra.mxu0 %v1647_v4  ;;  %1218 = vmatprep.mubr.msk.f32.mxu0 %vm1596_vm0, %v1597_v6 }
 0x3a9   :  { %1447 = vmatprep.subr.bf16.mxu0 %v1595_v3 }
 0x3ac   :  { %1449 = vmatpush3.bf16.msra.mxu0 %v1658_v7 }
 0x3ad   :  { %1450 = vmatprep.subr.bf16.mxu0 %v1595_v3 }
 0x3b0   :  { %1452 = vmatpush3.bf16.msra.mxu0 %v1670_v10 }
 0x3b1   :  { %1453 = vmatprep.subr.bf16.mxu0 %v1595_v3 }
 0x3b4   :  { %1455 = vmatpush3.bf16.msra.mxu0 %v1682_v13 }
 0x3b5   :  { %1456 = vmatprep.subr.bf16.mxu0 %v1595_v3 }
 0x3b8   :  { %1458 = vmatpush3.bf16.msra.mxu0 %v1694_v16 }
 0x3b9   :  { %1459 = vmatprep.subr.bf16.mxu0 %v1595_v3 }
 0x3bc   :  { %1461 = vmatpush3.bf16.msra.mxu0 %v1706_v19 }
 0x3bd   :  { %1462 = vmatprep.subr.bf16.mxu0 %v1595_v3 }
 0x3c0   :  { %1464 = vmatpush3.bf16.msra.mxu0 %v1718_v22 }
 0x3c1   :  { %1465 = vmatprep.subr.bf16.mxu0 %v1595_v3 }
 0x3c4   :  { %1467 = vmatpush3.bf16.msra.mxu0 %v1730_v25 }
 0x3c5   :  { %1493 = vmatprep.subr.bf16.mxu0 %v1492_v54 }
 0x47a   :  { %v410_v48 = vpop.f32.mrb[2].mxu0 }
 0x47b   :  { %v414_v49 = vadd.f32 %v410_v48, %v343_v47  ;;  %v1150_v50 = vpop.f32.mrb[3].mxu0 }
 0x47d   :  { %1539 = vtanh.f32 %v414_v49 }
 0x487   :  { %v1858_v51 = vpop.eup %1539 }
 0x488   :  { %1184 = vmatmul.mubr.f32.vlgmr.msra.gmra.mrb[6].mxu1 %v1858_v51 }
 0x489   :  { %1470 = vmatpush3.bf16.msra.mxu1 %v1647_v4  ;;  %1253 = vmatprep.mubr.msk.f32.mxu1 %vm1596_vm0, %v1597_v6  ;;  %v658_v6 = vld [vmem:[%s1970_s3 + $0x48] sm:$0xff] }
 0x48a   :  { %1471 = vmatprep.subr.bf16.mxu1 %v1595_v3 }
 0x48d   :  { %1473 = vmatpush3.bf16.msra.mxu1 %v1658_v7  ;;  %v1508_v7 = vpack.c.bf16 %v658_v6, %v657_v5 }
 0x48e   :  { %1474 = vmatprep.subr.bf16.mxu1 %v1595_v3 }
 0x491   :  { %1476 = vmatpush3.bf16.msra.mxu1 %v1670_v10  ;;  %v1512_v10 = vpack.c.bf16 %v660_v9, %v659_v8 }
 0x492   :  { %1477 = vmatprep.subr.bf16.mxu1 %v1595_v3 }
 0x495   :  { %1479 = vmatpush3.bf16.msra.mxu1 %v1682_v13  ;;  %v1516_v13 = vpack.c.bf16 %v662_v12, %v661_v11 }
 0x496   :  { %1480 = vmatprep.subr.bf16.mxu1 %v1595_v3 }
 0x499   :  { %1482 = vmatpush3.bf16.msra.mxu1 %v1694_v16  ;;  %v1520_v16 = vpack.c.bf16 %v664_v15, %v663_v14 }
 0x49a   :  { %1483 = vmatprep.subr.bf16.mxu1 %v1595_v3 }
 0x49d   :  { %1485 = vmatpush3.bf16.msra.mxu1 %v1706_v19 }
 0x49e   :  { %1486 = vmatprep.subr.bf16.mxu1 %v1595_v3 }
 0x4a1   :  { %1488 = vmatpush3.bf16.msra.mxu1 %v1718_v22  ;;  %v815_v22 = vld [vmem:[%s1971_s4] ss:$0 sm:$0xff] }
 0x4a2   :  { %1489 = vmatprep.subr.bf16.mxu1 %v1595_v3  ;;  %v656_v3 = vld [vmem:[%s1970_s3 + $0x38] sm:$0xff] }
 0x4a3   :  { %v1504_v4 = vpack.c.bf16 %v656_v3, %v655_v2 }
 0x4a5   :  { %1491 = vmatpush3.bf16.msra.mxu1 %v1730_v25 }
 0x55b   :  { %v484_v56 = vpop.f32.mrb[6].mxu1 }
 0x55c   :  { %v488_v57 = vadd.f32 %v484_v56, %v417_v55  ;;  %v1185_v58 = vpop.f32.mrb[7].mxu1 }
 0x55e   :  { %1541 = vtanh.f32 %v488_v57 }
 0x568   :  { %v1542_v62 = vpop.eup %1541 }
 0x569   :  { %1219 = vmatmul.mubr.f32.vlgmr.msra.gmra.mrb[4].mxu0 %v1542_v62 }
 0x56a   :  { %1495 = vmatpush3.bf16.msra.mxu0 %v1492_v54  ;;  %1288 = vmatprep.mubr.f32.mxu0 %v1763_v31 }
 0x56b   :  { %1497 = vmatprep.subr.bf16.mxu0 %v1496_v61 }
 0x56e   :  { %1499 = vmatpush3.bf16.msra.mxu0 %v1496_v61 }
 0x56f   :  { %1501 = vmatprep.subr.bf16.mxu0 %v1500_v1 }
 0x572   :  { %1503 = vmatpush3.bf16.msra.mxu0 %v1500_v1 }
 0x573   :  { %1505 = vmatprep.subr.bf16.mxu0 %v1504_v4 }
 0x576   :  { %1507 = vmatpush3.bf16.msra.mxu0 %v1504_v4 }
 0x577   :  { %1509 = vmatprep.subr.bf16.mxu0 %v1508_v7 }
 0x57a   :  { %1511 = vmatpush3.bf16.msra.mxu0 %v1508_v7 }
 0x57b   :  { %1513 = vmatprep.subr.bf16.mxu0 %v1512_v10 }
 0x57e   :  { %1515 = vmatpush3.bf16.msra.mxu0 %v1512_v10 }
 0x57f   :  { %1517 = vmatprep.subr.bf16.mxu0 %v1516_v13 }
 0x582   :  { %1519 = vmatpush3.bf16.msra.mxu0 %v1516_v13 }
 0x583   :  { %1521 = vmatprep.subr.bf16.mxu0 %v1520_v16 }
 0x586   :  { %1523 = vmatpush3.bf16.msra.mxu0 %v1520_v16 }
 0x589   :  { %1289 = vmatmul.mubr.f32.vlgmr.msra.gmra.mrb[6].mxu0 %v1787_v36 }
 0x58a   :  { %1291 = vmatprep.mubr.f32.mxu0 %v1811_v41 }
 0x58d   :  { %1292 = vmatmul.mubr.f32.gmra.mrb[8].mxu0 %v1835_v46 }
 0x58e   :  { %1294 = vmatprep.mubr.f32.mxu0 %v1858_v51 }
 0x591   :  { %1295 = vmatmul.mubr.f32.gmra.mrb[10].mxu0 %v1542_v62 }
 0x63c   :  { %v558_v18 = vpop.f32.mrb[4].mxu0 }
 0x63d   :  { %v562_v19 = vadd.f32 %v558_v18, %v491_v17  ;;  %v1220_v20 = vpop.f32.mrb[5].mxu0 }
 0x63f   :  { %1543 = vtanh.f32 %v562_v19 }
 0x649   :  { %v1544_v21 = vpop.eup %1543 }
 0x64a   :  { %1254 = vmatmul.mubr.f32.vlgmr.msra.gmra.mrb[8].mxu1 %v1544_v21  ;;  %1297 = vmatprep.mubr.f32.mxu0 %v1544_v21 }
 0x65c   :  { %v1290_v23 = vpop.f32.mrb[6].mxu0 }
 0x65d   :  { %v744_v24 = vadd.f32 %v1290_v23, %v815_v22  ;;  %v738_v25 = vpop.f32.mrb[7].mxu0 }
 0x65e   :  { %v739_v26 = vadd.f32 %v815_v22, %v738_v25 }
 0x65f   :  { %778 = vst [vmem:[#allocation4 + $0x8] sm:$0xff] %v744_v24 }
 0x660   :  { %777 = vst [vmem:[#allocation4] sm:$0xff] %v739_v26  ;;  %v1293_v27 = vpop.f32.mrb[8].mxu0 }
 0x661   :  { %v754_v28 = vadd.f32 %v1293_v27, %v815_v22  ;;  %v748_v29 = vpop.f32.mrb[9].mxu0 }
 0x662   :  { %v749_v30 = vadd.f32 %v815_v22, %v748_v29 }
 0x663   :  { %780 = vst [vmem:[#allocation4 + $0x18] sm:$0xff] %v754_v28 }
 0x664   :  { %779 = vst [vmem:[#allocation4 + $0x10] sm:$0xff] %v749_v30  ;;  %v1296_v31 = vpop.f32.mrb[10].mxu0 }
 0x665   :  { %v764_v32 = vadd.f32 %v1296_v31, %v815_v22  ;;  %v758_v33 = vpop.f32.mrb[11].mxu0 }
 0x666   :  { %v759_v34 = vadd.f32 %v815_v22, %v758_v33 }
 0x667   :  { %782 = vst [vmem:[#allocation4 + $0x28] sm:$0xff] %v764_v32 }
 0x668   :  { %781 = vst [vmem:[#allocation4 + $0x20] sm:$0xff] %v759_v34 }
 0x71d   :  { %v632_v36 = vpop.f32.mrb[8].mxu1 }
 0x71e   :  { %v636_v37 = vadd.f32 %v632_v36, %v565_v35  ;;  %v1255_v38 = vpop.f32.mrb[9].mxu1 }
 0x720   :  { %1545 = vtanh.f32 %v636_v37 }
 0x72a   :  { %v1546_v39 = vpop.eup %1545 }
 0x72b   :  { %640 = vst [vmem:[#allocation6] sm:$0xff] %v1546_v39  ;;  %1298 = vmatmul.mubr.f32.gmra.mrb[12].mxu0 %v1546_v39 }
 0x72c   :  { %1558 = shalt.err (!%p1555_p4)
}
 0x72d   :  { %s1559_s0 = scalar_lea.hbm %s1973_s6, 128 }
 0x72e   :  { %p1560_p5 = scmp.ne.s32.totalorder %s1973_s6, %s1559_s0  ;;  %p1563_p6 = scmp.lt.u32.totalorder %s1559_s0, %s1973_s6 }
 0x730   :  { %p1565_p7 = pnand %p1563_p6, %p1560_p5 }
 0x732   :  { %1568 = shalt.err (!%p1565_p7)
}
 0x733   :  { %806 = dma.vmem_to_hbm [thread:$0]  %s804_s28, 128, %s1973_s6, [#allocation7]  }
 0x734   :  { %s1599_s12 = smov [#allocation4]  }
 0x735   :  { %s790_s13 = sshll.u32 %s1599_s12, 4  ;;  %s791_s13 = int_to_ptr.vmem [resolvable:$true] %s790_s13 }
 0x736   :  { %s1569_s14 = scalar_lea.vmem %s791_s13, 1024  ;;  %p1574_p9 = scmp.lt.s32.totalorder %s791_s13, %s791_s13 }
 0x737   :  { %p1570_p8 = scmp.ne.s32.totalorder %s791_s13, %s1569_s14  ;;  %p1575_p10 = scmp.lt.s32.totalorder %s1569_s14, %s1569_s14 }
 0x739   :  { %p1576_p11 = por %p1575_p10, %p1574_p9 }
 0x73b   :  { %p1577_p12 = pnand %p1576_p11, %p1570_p8 }
 0x7fe   :  { %v1299_v40 = vpop.f32.mrb[12].mxu0 }
 0x7ff   :  { %v774_v41 = vadd.f32 %v1299_v40, %v815_v22  ;;  %v768_v42 = vpop.f32.mrb[13].mxu0 }
 0x800   :  { %v769_v43 = vadd.f32 %v815_v22, %v768_v42 }
 0x801   :  { %784 = vst [vmem:[#allocation4 + $0x38] sm:$0xff] %v774_v41 }
 0x802   :  { %783 = vst [vmem:[#allocation4 + $0x30] sm:$0xff] %v769_v43 }
 0x803   :  { %1580 = shalt.err (!%p1577_p12)
}
 0x804   :  { %s1581_s6 = scalar_lea.hbm %s1972_s5, 1024 }
 0x805   :  { %p1582_p13 = scmp.ne.s32.totalorder %s1972_s5, %s1581_s6  ;;  %p1585_p0 = scmp.lt.u32.totalorder %s1581_s6, %s1972_s5 }
 0x807   :  { %p1587_p1 = pnand %p1585_p0, %p1582_p13 }
 0x809   :  { %1590 = shalt.err (!%p1587_p1)
}
 0x80a   :  { %s1600_s21 = smov 128   ;;  %s1601_s22 = smov 8  }
 0x80b   :  { %796 = dma.vmem_to_hbm [thread:$0]  %s791_s13, 1024, %s1972_s5, [#allocation5], %s1600_s21, %s1600_s21, %s1601_s22  }
 0x80c   :  { %1591 = dma.done.wait [#allocation5], 1024  }
 0x80d   :  { %1592 = vsyncadd [#allocation5], 4294966272 }
 0x80e   :  { %1593 = dma.done.wait [#allocation7], 128  }
 0x80f   :  { %1594 = vsyncadd [#allocation7], 4294967168 }
 0x810   :  { %813 = vsyncpa [#allocation5], 1 }
 0x811   :  { %814 = vsyncpa [#allocation7], 1 }

</bundles_post_ra>
